<compile_context>
chip_gen: v6e
topology: v6e:2x2x1
jax: 0.10.0
libtpu: 0.0.40
codegen_flags: <defaults>
</compile_context>

<pallas_src>
import jax
import jax.numpy as jnp
import numpy as np
from jax.experimental import pallas as pl
from jax.experimental.pallas import tpu as pltpu


def _attention_kernel(x_ref, w1_ref, b1_ref, w2_ref, b2_ref, o_ref):
    tb, seq, hid = x_ref.shape
    x = x_ref[...]                                   # (TB, S, H), native dtype
    x2d = x.reshape(tb * seq, hid)                   # one tall matmul keeps MXU fed

    # energy MLP stage 1: tanh(x @ W1 + b1), f32 accumulation on the MXU
    h = jnp.tanh(
        jnp.dot(x2d, w1_ref[...], preferred_element_type=jnp.float32)
        + b1_ref[...].astype(jnp.float32)            # (1, H) broadcasts
    )                                                # (TB*S, H) f32

    # energy MLP stage 2: Linear(H, 1) as VPU multiply + cross-lane reduce
    # (an N=1 MXU matmul would waste a full vmatmul/vpop pass).
    e = jnp.sum(h * w2_ref[...].astype(jnp.float32), axis=-1, keepdims=True)
    e = e + b2_ref[...].astype(jnp.float32)          # (TB*S, 1)
    e = e.reshape(tb, seq, 1)

    # softmax over the sequence axis (dim=-2 of the PyTorch module), stabilized
    m = jnp.max(e, axis=1, keepdims=True)            # (TB, 1, 1)
    p = jnp.exp(e - m)                               # (TB, S, 1)
    denom = jnp.sum(p, axis=1, keepdims=True)        # (TB, 1, 1)
    alpha = p * pl.reciprocal(denom, approx=True)    # EUP vrcp slot is free here

    # weighted sum over the sequence axis (alpha is f32 -> f32 accumulation)
    o_ref[...] = jnp.sum(x * alpha, axis=1).astype(o_ref.dtype)


def attention_pallas(x, w1, b1, w2, b2, *, tb=None):
    """x: (B, S, H); w1: (H, H) stored (in, out); b1: (1, H); w2: (H, 1); b2: (1, 1)."""
    B, S, H = x.shape
    itemsize = jnp.dtype(x.dtype).itemsize

    if tb is None:
        # Target ~4 MiB x-blocks (double-buffered -> ~8 MiB): comfortably under
        # the 16 MiB v5e default scoped VMEM and far under v6e/v7x limits, so
        # no vmem_limit_bytes override is needed.  Multiple of 8 sublanes.
        tb = max(8, min(1024, (4 << 20) // max(S * H * itemsize, 1)))
        tb = (tb // 8) * 8
    # Never exceed the (8-padded) batch size.
    tb = min(tb, pl.cdiv(B, 8) * 8)

    b_pad = pl.cdiv(B, tb) * tb
    if b_pad != B:
        x = jnp.pad(x, ((0, b_pad - B), (0, 0), (0, 0)))

    # Present the Linear(H, 1) weight lane-major (1, H) for the in-kernel
    # VPU multiply + lane reduce.
    w2_row = w2.reshape(1, H)

    out = pl.pallas_call(
        _attention_kernel,
        out_shape=jax.ShapeDtypeStruct((b_pad, H), x.dtype),
        grid_spec=pltpu.PrefetchScalarGridSpec(
            num_scalar_prefetch=0,
            grid=(b_pad // tb,),
            in_specs=[
                pl.BlockSpec((tb, S, H), lambda i: (i, 0, 0)),   # TB batch rows/step
                # Weights use constant index_maps (grid-resident).  At H=32 the
                # default double-buffering costs ~8 KiB total; if H grows, add
                # pipeline_mode=pl.Buffered(1) here to save VMEM headroom.
                pl.BlockSpec((H, H), lambda i: (0, 0)),          # W1
                pl.BlockSpec((1, H), lambda i: (0, 0)),          # b1
                pl.BlockSpec((1, H), lambda i: (0, 0)),          # W2 (row-major)
                pl.BlockSpec((1, 1), lambda i: (0, 0)),          # b2
            ],
            out_specs=pl.BlockSpec((tb, H), lambda i: (i, 0)),
        ),
        compiler_params=pltpu.CompilerParams(
            # Parallel batch axis: shards grid steps across both v7x
            # TensorCores; a no-op on single-TC v5e/v6e.
            dimension_semantics=("parallel",),
        ),
    )(x, w1, b1, w2_row, b2)

    return out[:B]


def attention_ref(x, w1, b1, w2, b2):
    """Pure-JAX reference matching the PyTorch module semantics."""
    h = jnp.tanh(x @ w1 + b1.reshape(1, 1, -1))
    e = h @ w2 + b2.reshape(1, 1, 1)                 # (B, S, 1)
    alpha = jax.nn.softmax(e, axis=-2)               # softmax over seq
    return jnp.sum(x * alpha, axis=-2)               # (B, H)


if __name__ == "__main__":
    B, S, H = 2, 8, 32

    key = jax.random.PRNGKey(0)
    kx, kw1, kb1, kw2, kb2 = jax.random.split(key, 5)

    x = jax.random.normal(kx, (B, S, H), dtype=jnp.float32)

    # Deterministic parameter init (PyTorch Linear stores W as (out, in);
    # we keep the math y = x @ W^T + b by materializing W^T = (in, out) here).
    bound1 = 1.0 / np.sqrt(H)
    w1 = jax.random.uniform(kw1, (H, H), jnp.float32, -bound1, bound1)   # (in, out)
    b1 = jax.random.uniform(kb1, (1, H), jnp.float32, -bound1, bound1)
    w2 = jax.random.uniform(kw2, (H, 1), jnp.float32, -bound1, bound1)   # (in, out)
    b2 = jax.random.uniform(kb2, (1, 1), jnp.float32, -bound1, bound1)

    out = attention_pallas(x, w1, b1, w2, b2)
    out = jax.block_until_ready(out)

    ref = attention_ref(x, w1, b1, w2, b2)
    # Tolerance loosened slightly vs. exact math because the softmax
    # denominator uses the EUP approximate reciprocal (pl.reciprocal approx=True).
    np.testing.assert_allclose(np.asarray(out), np.asarray(ref), rtol=2e-3, atol=2e-3)

    print("KERNEL_OK")
</pallas_src>

<mosaic_0001>
module attributes {stable_mosaic.version = 11 : i64} {
  func.func @_attention_kernel(%arg0: i32, %arg1: memref<8x8x32xf32, #tpu.memory_space<vmem>>, %arg2: memref<32x32xf32, #tpu.memory_space<vmem>>, %arg3: memref<1x32xf32, #tpu.memory_space<vmem>>, %arg4: memref<1x32xf32, #tpu.memory_space<vmem>>, %arg5: memref<1x1xf32, #tpu.memory_space<vmem>>, %arg6: memref<8x32xf32, #tpu.memory_space<vmem>>) attributes {dimension_semantics = [#tpu.dimension_semantics<parallel>], iteration_bounds = array<i64: 1>, scalar_prefetch = 0 : i64, scratch_operands = 0 : i64, tpu.core_type = #tpu.core_type<tc>, window_params = [{transform_indices = @transform_0, window_bounds = array<i64: 8, 8, 32>}, {pipeline_mode = #tpu.pipeline_mode<synchronous>, transform_indices = @transform_1, window_bounds = array<i64: 32, 32>}, {pipeline_mode = #tpu.pipeline_mode<synchronous>, transform_indices = @transform_2, window_bounds = array<i64: 1, 32>}, {pipeline_mode = #tpu.pipeline_mode<synchronous>, transform_indices = @transform_3, window_bounds = array<i64: 1, 32>}, {pipeline_mode = #tpu.pipeline_mode<synchronous>, transform_indices = @transform_4, window_bounds = array<i64: 1, 1>}, {transform_indices = @transform_5, window_bounds = array<i64: 8, 32>}]} {
    %c0 = arith.constant 0 : index
    %c0_0 = arith.constant 0 : index
    %c0_1 = arith.constant 0 : index
    %0 = vector.load %arg1[%c0, %c0_0, %c0_1] : memref<8x8x32xf32, #tpu.memory_space<vmem>>, vector<8x8x32xf32>
    %1 = vector.shape_cast %0 : vector<8x8x32xf32> to vector<64x32xf32>
    %c0_2 = arith.constant 0 : index
    %c0_3 = arith.constant 0 : index
    %2 = vector.load %arg2[%c0_2, %c0_3] : memref<32x32xf32, #tpu.memory_space<vmem>>, vector<32x32xf32>
    %cst = arith.constant dense<0.000000e+00> : vector<64x32xf32>
    %3 = tpu.matmul %1, %2, %cst {dimension_numbers = #tpu.dot_dimension_numbers<[1], [0], [0], [1], [0, 0, 1, 1], [], []>} : vector<64x32xf32>, vector<32x32xf32>, vector<64x32xf32> -> vector<64x32xf32>
    %c0_4 = arith.constant 0 : index
    %c0_5 = arith.constant 0 : index
    %4 = vector.load %arg3[%c0_4, %c0_5] : memref<1x32xf32, #tpu.memory_space<vmem>>, vector<1x32xf32>
    %5 = vector.broadcast %4 : vector<1x32xf32> to vector<64x32xf32>
    %6 = arith.addf %3, %5 : vector<64x32xf32>
    %7 = math.tanh %6 : vector<64x32xf32>
    %c0_6 = arith.constant 0 : index
    %c0_7 = arith.constant 0 : index
    %8 = vector.load %arg4[%c0_6, %c0_7] : memref<1x32xf32, #tpu.memory_space<vmem>>, vector<1x32xf32>
    %9 = vector.broadcast %8 : vector<1x32xf32> to vector<64x32xf32>
    %10 = arith.mulf %7, %9 : vector<64x32xf32>
    %cst_8 = arith.constant dense<0.000000e+00> : vector<64xf32>
    %11 = vector.multi_reduction <add>, %10, %cst_8 [1] : vector<64x32xf32> to vector<64xf32>
    %12 = vector.shape_cast %11 : vector<64xf32> to vector<64x1xf32>
    %c0_9 = arith.constant 0 : index
    %c0_10 = arith.constant 0 : index
    %13 = vector.load %arg5[%c0_9, %c0_10] : memref<1x1xf32, #tpu.memory_space<vmem>>, vector<1x1xf32>
    %14 = vector.broadcast %13 : vector<1x1xf32> to vector<64x1xf32>
    %15 = arith.addf %12, %14 : vector<64x1xf32>
    %16 = vector.shape_cast %15 : vector<64x1xf32> to vector<8x8x1xf32>
    %cst_11 = arith.constant dense<0xFF800000> : vector<8x1xf32>
    %17 = vector.multi_reduction <maximumf>, %16, %cst_11 [1] : vector<8x8x1xf32> to vector<8x1xf32>
    %18 = vector.shape_cast %17 : vector<8x1xf32> to vector<8x1x1xf32>
    %19 = vector.broadcast %18 : vector<8x1x1xf32> to vector<8x8x1xf32>
    %20 = arith.subf %16, %19 : vector<8x8x1xf32>
    %21 = math.exp %20 : vector<8x8x1xf32>
    %cst_12 = arith.constant dense<0.000000e+00> : vector<8x1xf32>
    %22 = vector.multi_reduction <add>, %21, %cst_12 [1] : vector<8x8x1xf32> to vector<8x1xf32>
    %23 = vector.shape_cast %22 : vector<8x1xf32> to vector<8x1x1xf32>
    %24 = tpu.reciprocal %23 {approx = true} : vector<8x1x1xf32> -> vector<8x1x1xf32>
    %25 = vector.broadcast %24 : vector<8x1x1xf32> to vector<8x8x1xf32>
    %26 = arith.mulf %21, %25 : vector<8x8x1xf32>
    %27 = vector.broadcast %26 : vector<8x8x1xf32> to vector<8x8x32xf32>
    %28 = arith.mulf %0, %27 : vector<8x8x32xf32>
    %cst_13 = arith.constant dense<0.000000e+00> : vector<8x32xf32>
    %29 = vector.multi_reduction <add>, %28, %cst_13 [1] : vector<8x8x32xf32> to vector<8x32xf32>
    %c0_14 = arith.constant 0 : index
    %c0_15 = arith.constant 0 : index
    %30 = vector.load %arg6[%c0_14, %c0_15] : memref<8x32xf32, #tpu.memory_space<vmem>>, vector<8x32xf32>
    tpu.vector_store %arg6[%c0_14, %c0_15], %29 {strides = array<i32>} : memref<8x32xf32, #tpu.memory_space<vmem>>, vector<8x32xf32>,
    return
  }
  func.func @transform_0(%arg0: i32) -> (i32, i32, i32) {
    %c0_i32 = arith.constant 0 : i32
    %c0_i32_0 = arith.constant 0 : i32
    %c0_i32_1 = arith.constant 0 : i32
    return %arg0, %c0_i32, %c0_i32_0 : i32, i32, i32
  }
  func.func @transform_1(%arg0: i32) -> (i32, i32) {
    %c0_i32 = arith.constant 0 : i32
    %c0_i32_0 = arith.constant 0 : i32
    %c0_i32_1 = arith.constant 0 : i32
    return %c0_i32, %c0_i32_0 : i32, i32
  }
  func.func @transform_2(%arg0: i32) -> (i32, i32) {
    %c0_i32 = arith.constant 0 : i32
    %c0_i32_0 = arith.constant 0 : i32
    %c0_i32_1 = arith.constant 0 : i32
    return %c0_i32, %c0_i32_0 : i32, i32
  }
  func.func @transform_3(%arg0: i32) -> (i32, i32) {
    %c0_i32 = arith.constant 0 : i32
    %c0_i32_0 = arith.constant 0 : i32
    %c0_i32_1 = arith.constant 0 : i32
    return %c0_i32, %c0_i32_0 : i32, i32
  }
  func.func @transform_4(%arg0: i32) -> (i32, i32) {
    %c0_i32 = arith.constant 0 : i32
    %c0_i32_0 = arith.constant 0 : i32
    %c0_i32_1 = arith.constant 0 : i32
    return %c0_i32, %c0_i32_0 : i32, i32
  }
  func.func @transform_5(%arg0: i32) -> (i32, i32) {
    %c0_i32 = arith.constant 0 : i32
    %c0_i32_0 = arith.constant 0 : i32
    return %arg0, %c0_i32 : i32, i32
  }
}

</mosaic_0001>

<bundles_post_ra>
// kernel: tpu_custom_call.1
= control target key start
LH: loop header
LB: loop body
LE: loop exit
PB: predicated region body
PF: predicated region fallthrough
CT: control target
= control target key end

     0   :  { %s883_s0 = inlined_call_operand.hbm [shape: f32[8,8,32], index: 0, kind: input, shape index: {}]   ;;  %s884_s1 = inlined_call_operand.hbm [shape: f32[32,32], index: 1, kind: input, shape index: {}]   ;;  %s885_s2 = inlined_call_operand.vmem [shape: f32[1,32], index: 2, kind: input, shape index: {}]   ;;  %s886_s3 = inlined_call_operand.vmem [shape: f32[1,32], index: 3, kind: input, shape index: {}]   ;;  %s887_s4 = inlined_call_operand.<no memory space> [shape: f32[1,1], index: 4, kind: input, shape index: {}]   ;;  %s888_s5 = inlined_call_operand.hbm [shape: f32[8,32], index: 5, kind: output, shape index: {}]  }
   0x1   :  { %v10_v0 = vstv %s887_s4 }
   0x2   :  { %11 = vst [vmem:[#allocation2] sm:$0x1] %v10_v0 }
   0x3   :  { %12 = vsyncpa [#allocation4], 0 }
   0x4   :  { %13 = vsyncpa [#allocation7], 0 }
   0x5   :  { %14 = vsyncpa [#allocation5], 0  ;;  %s732_s20 = smov [#allocation3]  }
   0x6   :  { %s20_s21 = sshll.u32 %s732_s20, 4  ;;  %s21_s21 = int_to_ptr.vmem [resolvable:$true] %s20_s21 }
   0x7   :  { %s674_s22 = scalar_lea.vmem %s21_s21, 1024  ;;  %p679_p1 = scmp.lt.s32.totalorder %s21_s21, %s21_s21 }
   0x8   :  { %p675_p0 = scmp.ne.s32.totalorder %s21_s21, %s674_s22  ;;  %p680_p2 = scmp.lt.s32.totalorder %s674_s22, %s674_s22 }
   0xa   :  { %p681_p3 = por %p680_p2, %p679_p1 }
   0xc   :  { %p682_p4 = pnand %p681_p3, %p675_p0 }
   0xe   :  { %685 = shalt.err (!%p682_p4)
}
   0xf   :  { %s733_s23 = smov 128   ;;  %s734_s24 = smov 8  }
  0x10   :  { %26 = dma.hbm_to_vmem [thread:$0]  %s883_s0, 1024, %s21_s21, [#allocation4], %s733_s23, %s733_s23, %s734_s24  }
  0x11   :  { %s735_s4 = smov [#allocation6]  }
  0x12   :  { %s32_s27 = sshll.u32 %s735_s4, 4  ;;  %s33_s27 = int_to_ptr.vmem [resolvable:$true] %s32_s27 }
  0x13   :  { %s694_s28 = scalar_lea.vmem %s33_s27, 512  ;;  %p699_p6 = scmp.lt.s32.totalorder %s33_s27, %s33_s27 }
  0x14   :  { %p695_p5 = scmp.ne.s32.totalorder %s33_s27, %s694_s28  ;;  %p700_p7 = scmp.lt.s32.totalorder %s694_s28, %s694_s28 }
  0x16   :  { %p701_p8 = por %p700_p7, %p699_p6 }
  0x18   :  { %p702_p9 = pnand %p701_p8, %p695_p5 }
  0x1a   :  { %705 = shalt.err (!%p702_p9)
}
  0x1b   :  { %38 = dma.hbm_to_vmem [thread:$0]  %s884_s1, 512, %s33_s27, [#allocation7], %s733_s23, %s733_s23, %s734_s24  }
  0x1c   :  { %726 = dma.done.wait [#allocation4], 1024  }
  0x1d   :  { %727 = vsyncadd [#allocation4], 4294966272 }
  0x1e   :  { %728 = dma.done.wait [#allocation7], 512  }
  0x1f   :  { %729 = vsyncadd [#allocation7], 4294966784  ;;  %v62_v1 = vld [vmem:[#allocation6 + $0x18] sm:$0xff]  ;;  %v61_v2 = vld [vmem:[#allocation6 + $0x10] sm:$0xff]  ;;  %vm70_vm0 = vcmask 261120   ;;  %v736_v55 = vmov 0  }
  0x20   :  { %582 = vmatprep.subr.mxu0 %v62_v1  ;;  %602 = vmatprep.subr.mxu1 %v62_v1  ;;  %v777_v3 = vld [vmem:[#allocation3] sm:$0xff]  ;;  %v60_v4 = vld [vmem:[#allocation6 + $0x8] sm:$0xff]  ;;  %v783_v7 = vld [vmem:[#allocation3 + $0x10] sm:$0xff]  ;;  %vm262_vm1 = vcmask 7168   ;;  %vm527_vm2 = vcmask 1041409   ;;  %vm529_vm3 = vcmask 1042434  }
  0x21   :  { %583 = vmatpush3.msra.mxu0 %v62_v1  ;;  %606 = vmatpush3.msra.mxu1 %v62_v1  ;;  %v59_v5 = vld [vmem:[#allocation6] sm:$0xff]  ;;  %v781_v6 = vld [vmem:[#allocation3 + $0x8] sm:$0xff]  ;;  %v791_v10 = vld [vmem:[#allocation3 + $0x30] sm:$0xff]  ;;  %vm531_vm4 = vcmask 1043459   ;;  %vm533_vm5 = vcmask 1044484   ;;  %vm535_vm6 = vcmask 1045509  }
  0x22   :  { %584 = vmatprep.subr.mxu0 %v61_v2  ;;  %590 = vmatprep.mubr.msk.f32.mxu0 %vm70_vm0, %v777_v3  ;;  %v785_v8 = vld [vmem:[#allocation3 + $0x20] sm:$0xff]  ;;  %v787_v9 = vld [vmem:[#allocation3 + $0x28] sm:$0xff]  ;;  %v795_v11 = vld [vmem:[#allocation3 + $0x18] sm:$0xff]  ;;  %vm537_vm7 = vcmask 1046534   ;;  %vm539_vm8 = vcmask 1047559  }
  0x23   :  { %585 = vmatpush3.msra.mxu0 %v61_v2  ;;  %603 = vmatprep.subr.mxu1 %v61_v2  ;;  %v803_v12 = vld [vmem:[#allocation3 + $0x38] sm:$0xff] }
  0x24   :  { %586 = vmatprep.subr.mxu0 %v60_v4  ;;  %607 = vmatpush3.msra.mxu1 %v61_v2  ;;  %v559_v13 = vld [vmem:[%s885_s2] ss:$0 sm:$0xff] }
  0x25   :  { %587 = vmatpush3.msra.mxu0 %v60_v4  ;;  %604 = vmatprep.subr.mxu1 %v60_v4  ;;  %v568_v30 = vld [vmem:[%s886_s3] ss:$0 sm:$0xff]  ;;  %s737_s3 = smov [#allocation8]  }
  0x26   :  { %588 = vmatprep.subr.mxu0 %v59_v5  ;;  %608 = vmatpush3.msra.mxu1 %v60_v4  ;;  %v569_v56 = vld [vmem:[#allocation2] ss:$0 sm:$0xff]  ;;  %s549_s7 = sshll.u32 %s737_s3, 4  ;;  %s550_s7 = int_to_ptr.vmem [resolvable:$true] %s549_s7 }
  0x27   :  { %589 = vmatpush3.msra.mxu0 %v59_v5  ;;  %605 = vmatprep.subr.mxu1 %v59_v5  ;;  %s706_s8 = scalar_lea.vmem %s550_s7, 128  ;;  %p711_p11 = scmp.lt.s32.totalorder %s550_s7, %s550_s7 }
  0x28   :  { %591 = vmatmul.mubr.msk.f32.vlgmr.msra.gmra.mxu0 %vm70_vm0, %v781_v6  ;;  %609 = vmatpush3.msra.mxu1 %v59_v5  ;;  %p707_p10 = scmp.ne.s32.totalorder %s550_s7, %s706_s8  ;;  %p712_p12 = scmp.lt.s32.totalorder %s706_s8, %s706_s8 }
  0x29   :  { %593 = vmatprep.mubr.msk.f32.mxu0 %vm70_vm0, %v783_v7  ;;  %596 = vmatprep.mubr.msk.f32.mxu1 %vm70_vm0, %v785_v8 }
  0x2a   :  { %597 = vmatmul.mubr.msk.f32.vlgmr.msra.gmra.mxu1 %vm70_vm0, %v787_v9  ;;  %617 = vset.pattern.permute.xlu1 %v736_v55  ;;  %p713_p13 = por %p712_p12, %p711_p11 }
  0x2b   :  { %599 = vmatprep.mubr.msk.f32.mxu1 %vm70_vm0, %v791_v10  ;;  %616 = vset.pattern.permute.xlu0 %v736_v55 }
  0x2c   :  { %594 = vmatmul.mubr.msk.f32.gmra.mxu0 %vm70_vm0, %v795_v11  ;;  %p714_p0 = pnand %p713_p13, %p707_p10 }
  0x2e   :  { %600 = vmatmul.mubr.msk.f32.gmra.mxu1 %vm70_vm0, %v803_v12 }
  0xe8   :  { %v592_v14 = vpop.f32.mrf.mxu0 }
  0xe9   :  { %v167_v15 = vadd.f32 %v592_v14, %v559_v13 }
  0xea   :  { %v161_v16 = vpop.f32.mrf.mxu0  ;;  %v598_v17 = vpop.f32.mrf.mxu1 }
  0xeb   :  { %618 = vtanh.f32 %v167_v15  ;;  %v162_v18 = vadd.f32 %v559_v13, %v161_v16  ;;  %v187_v19 = vadd.f32 %v598_v17, %v559_v13 }
  0xec   :  { %v595_v20 = vpop.f32.mrf.mxu0  ;;  %v181_v21 = vpop.f32.mrf.mxu1 }
  0xed   :  { %620 = vtanh.f32 %v162_v18  ;;  %v177_v22 = vadd.f32 %v595_v20, %v559_v13  ;;  %v182_v23 = vadd.f32 %v559_v13, %v181_v21 }
  0xee   :  { %v171_v24 = vpop.f32.mrf.mxu0  ;;  %622 = vtanh.f32 %v187_v19  ;;  %v601_v25 = vpop.f32.mrf.mxu1 }
  0xef   :  { %624 = vtanh.f32 %v177_v22  ;;  %v172_v26 = vadd.f32 %v559_v13, %v171_v24  ;;  %v197_v28 = vadd.f32 %v601_v25, %v559_v13 }
  0xf0   :  { %626 = vtanh.f32 %v182_v23  ;;  %v191_v27 = vpop.f32.mrf.mxu1 }
  0xf1   :  { %628 = vtanh.f32 %v172_v26  ;;  %v192_v29 = vadd.f32 %v559_v13, %v191_v27 }
  0xf3   :  { %630 = vtanh.f32 %v192_v29 }
  0xf4   :  { %632 = vtanh.f32 %v197_v28 }
  0xf8   :  { %v619_v31 = vpop.eup %618 }
  0xf9   :  { %v216_v32 = vmul.f32 %v619_v31, %v568_v30 }
  0xfa   :  { %v621_v33 = vpop.eup %620 }
  0xfb   :  { %v623_v34 = vpop.eup %622  ;;  %v226_v35 = vsel %vm70_vm0, %v216_v32, 0.0  ;;  %v215_v36 = vmul.f32 %v621_v33, %v568_v30 }
  0xfc   :  { %v625_v37 = vpop.eup %624  ;;  %227 = vadd.xlane.f32.xlu0 %v226_v35  ;;  %v220_v47 = vmul.f32 %v623_v34, %v568_v30 }
  0xfd   :  { %v627_v38 = vpop.eup %626  ;;  %v218_v39 = vmul.f32 %v625_v37, %v568_v30  ;;  %v223_v43 = vsel %vm70_vm0, %v215_v36, 0.0 }
  0xfe   :  { %v629_v40 = vpop.eup %628  ;;  %v219_v41 = vmul.f32 %v627_v38, %v568_v30  ;;  %v238_v51 = vsel %vm70_vm0, %v220_v47, 0.0 }
  0xff   :  { %v232_v42 = vsel %vm70_vm0, %v218_v39, 0.0  ;;  %v217_v44 = vmul.f32 %v629_v40, %v568_v30 }
 0x100   :  { %v631_v45 = vpop.eup %630  ;;  %233 = vadd.xlane.f32.xlu1 %v232_v42  ;;  %224 = vadd.xlane.f32.xlu0 %v223_v43  ;;  %v235_v46 = vsel %vm70_vm0, %v219_v41, 0.0 }
 0x101   :  { %v221_v48 = vmul.f32 %v631_v45, %v568_v30  ;;  %v633_v49 = vpop.eup %632  ;;  %v229_v50 = vsel %vm70_vm0, %v217_v44, 0.0 }
 0x102   :  { %v222_v53 = vmul.f32 %v633_v49, %v568_v30 }
 0x103   :  { %v241_v52 = vsel %vm70_vm0, %v221_v48, 0.0 }
 0x104   :  { %230 = vadd.xlane.f32.xlu1 %v229_v50  ;;  %236 = vadd.xlane.f32.xlu0 %v235_v46  ;;  %v244_v54 = vsel %vm70_vm0, %v222_v53, 0.0 }
 0x108   :  { %239 = vadd.xlane.f32.xlu1 %v238_v51  ;;  %242 = vadd.xlane.f32.xlu0 %v241_v52 }
 0x10c   :  { %245 = vadd.xlane.f32.xlu1 %v244_v54 }
 0x185   :  { %v228_v57 = vpop.xlane.xlu0 %227 }
 0x186   :  { %v255_v58 = vadd.f32 %v569_v56, %v228_v57 }
 0x188   :  { %v270_v59 = vsel %vm262_vm1, %v255_v58, -inf }
 0x189   :  { %v271_v60 = vrot.slane %v270_v59, 4  ;;  %v234_v61 = vpop.xlane.xlu1 %233  ;;  %v225_v62 = vpop.xlane.xlu0 %224 }
 0x18a   :  { %v257_v63 = vadd.f32 %v569_v56, %v234_v61  ;;  %v254_v0 = vadd.f32 %v569_v56, %v225_v62 }
 0x18b   :  { %v272_v1 = vmax.f32 %v270_v59, %v271_v60 }
 0x18c   :  { %v284_v2 = vsel %vm262_vm1, %v257_v63, -inf  ;;  %v263_v4 = vsel %vm262_vm1, %v254_v0, -inf }
 0x18d   :  { %v273_v5 = vrot.slane %v272_v1, 2  ;;  %v285_v13 = vrot.slane %v284_v2, 4  ;;  %v264_v14 = vrot.slane %v263_v4, 4  ;;  %v231_v15 = vpop.xlane.xlu1 %230  ;;  %v237_v16 = vpop.xlane.xlu0 %236 }
 0x18e   :  { %v256_v17 = vadd.f32 %v569_v56, %v231_v15  ;;  %v258_v18 = vadd.f32 %v569_v56, %v237_v16 }
 0x18f   :  { %v274_v19 = vmax.f32 %v272_v1, %v273_v5  ;;  %v286_v20 = vmax.f32 %v284_v2, %v285_v13  ;;  %v265_v21 = vmax.f32 %v263_v4, %v264_v14 }
 0x190   :  { %v277_v22 = vsel %vm262_vm1, %v256_v17, -inf  ;;  %v291_v23 = vsel %vm262_vm1, %v258_v18, -inf }
 0x191   :  { %v275_v24 = vrot.slane %v274_v19, 1  ;;  %v287_v25 = vrot.slane %v286_v20, 2  ;;  %v266_v26 = vrot.slane %v265_v21, 2  ;;  %v278_v27 = vrot.slane %v277_v22, 4  ;;  %v240_v28 = vpop.xlane.xlu1 %239  ;;  %v243_v29 = vpop.xlane.xlu0 %242 }
 0x192   :  { %v292_v30 = vrot.slane %v291_v23, 4  ;;  %v259_v31 = vadd.f32 %v569_v56, %v240_v28  ;;  %v260_v32 = vadd.f32 %v569_v56, %v243_v29 }
 0x193   :  { %v276_v33 = vmax.f32 %v274_v19, %v275_v24  ;;  %v288_v34 = vmax.f32 %v286_v20, %v287_v25  ;;  %v267_v35 = vmax.f32 %v265_v21, %v266_v26  ;;  %v279_v36 = vmax.f32 %v277_v22, %v278_v27 }
 0x194   :  { %v293_v37 = vmax.f32 %v291_v23, %v292_v30  ;;  %v298_v38 = vsel %vm262_vm1, %v259_v31, -inf  ;;  %v305_v39 = vsel %vm262_vm1, %v260_v32, -inf }
 0x195   :  { %v320_v40 = vsub.f32 %v255_v58, %v276_v33  ;;  %v289_v41 = vrot.slane %v288_v34, 1  ;;  %v268_v42 = vrot.slane %v267_v35, 1  ;;  %v280_v43 = vrot.slane %v279_v36, 2  ;;  %v246_v44 = vpop.xlane.xlu1 %245 }
 0x196   :  { %v294_v45 = vrot.slane %v293_v37, 2  ;;  %v299_v46 = vrot.slane %v298_v38, 4  ;;  %v306_v47 = vrot.slane %v305_v39, 4  ;;  %v261_v48 = vadd.f32 %v569_v56, %v246_v44 }
 0x197   :  { %v329_v49 = vmul.f32 1.442695, %v320_v40  ;;  %v290_v50 = vmax.f32 %v288_v34, %v289_v41  ;;  %v269_v51 = vmax.f32 %v267_v35, %v268_v42  ;;  %v281_v52 = vmax.f32 %v279_v36, %v280_v43 }
 0x198   :  { %v295_v53 = vmax.f32 %v293_v37, %v294_v45  ;;  %v300_v54 = vmax.f32 %v298_v38, %v299_v46  ;;  %v307_v55 = vmax.f32 %v305_v39, %v306_v47  ;;  %v312_v57 = vsel %vm262_vm1, %v261_v48, -inf }
 0x199   :  { %634 = vpow2.f32 %v329_v49  ;;  %v322_v59 = vsub.f32 %v257_v63, %v290_v50  ;;  %v319_v58 = vsub.f32 %v254_v0, %v269_v51  ;;  %v282_v60 = vrot.slane %v281_v52, 1 }
 0x19a   :  { %v296_v61 = vrot.slane %v295_v53, 1  ;;  %v301_v62 = vrot.slane %v300_v54, 2  ;;  %v308_v1 = vrot.slane %v307_v55, 2  ;;  %v313_v2 = vrot.slane %v312_v57, 4 }
 0x19b   :  { %v333_v4 = vmul.f32 1.442695, %v322_v59  ;;  %v327_v5 = vmul.f32 1.442695, %v319_v58  ;;  %v283_v56 = vmax.f32 %v281_v52, %v282_v60 }
 0x19c   :  { %v297_v13 = vmax.f32 %v295_v53, %v296_v61  ;;  %v302_v14 = vmax.f32 %v300_v54, %v301_v62  ;;  %v309_v15 = vmax.f32 %v307_v55, %v308_v1  ;;  %v314_v16 = vmax.f32 %v312_v57, %v313_v2 }
 0x19d   :  { %636 = vpow2.f32 %v333_v4  ;;  %v321_v19 = vsub.f32 %v256_v17, %v283_v56 }
 0x19e   :  { %638 = vpow2.f32 %v327_v5  ;;  %v323_v20 = vsub.f32 %v258_v18, %v297_v13  ;;  %v303_v21 = vrot.slane %v302_v14, 1  ;;  %v310_v22 = vrot.slane %v309_v15, 1 }
 0x19f   :  { %v331_v63 = vmul.f32 1.442695, %v321_v19  ;;  %v315_v0 = vrot.slane %v314_v16, 2 }
 0x1a0   :  { %v335_v23 = vmul.f32 1.442695, %v323_v20  ;;  %v304_v24 = vmax.f32 %v302_v14, %v303_v21  ;;  %v311_v25 = vmax.f32 %v309_v15, %v310_v22 }
 0x1a1   :  { %640 = vpow2.f32 %v331_v63  ;;  %v316_v26 = vmax.f32 %v314_v16, %v315_v0 }
 0x1a2   :  { %642 = vpow2.f32 %v335_v23  ;;  %v324_v27 = vsub.f32 %v259_v31, %v304_v24  ;;  %v325_v28 = vsub.f32 %v260_v32, %v311_v25 }
 0x1a3   :  { %v317_v29 = vrot.slane %v316_v26, 1 }
 0x1a4   :  { %v337_v30 = vmul.f32 1.442695, %v324_v27  ;;  %v339_v33 = vmul.f32 1.442695, %v325_v28 }
 0x1a5   :  { %v318_v34 = vmax.f32 %v316_v26, %v317_v29 }
 0x1a6   :  { %v831_v35 = vpop.eup %634  ;;  %644 = vpow2.f32 %v337_v30 }
 0x1a7   :  { %v350_v17 = vsel %vm262_vm1, %v831_v35, 0.0  ;;  %646 = vpow2.f32 %v339_v33  ;;  %v326_v18 = vsub.f32 %v261_v48, %v318_v34 }
 0x1a8   :  { %v351_v36 = vrot.slane %v350_v17, 4 }
 0x1a9   :  { %v341_v37 = vmul.f32 1.442695, %v326_v18 }
 0x1aa   :  { %v835_v38 = vpop.eup %636  ;;  %v352_v39 = vadd.f32 %v351_v36, %v350_v17 }
 0x1ab   :  { %v837_v40 = vpop.eup %638  ;;  %v364_v31 = vsel %vm262_vm1, %v835_v38, 0.0  ;;  %648 = vpow2.f32 %v341_v37 }
 0x1ac   :  { %v353_v32 = vrot.slane %v352_v39, 2  ;;  %v343_v41 = vsel %vm262_vm1, %v837_v40, 0.0  ;;  %v365_v44 = vrot.slane %v364_v31, 4 }
 0x1ad   :  { %v344_v42 = vrot.slane %v343_v41, 4 }
 0x1ae   :  { %v843_v43 = vpop.eup %640  ;;  %v354_v45 = vadd.f32 %v353_v32, %v352_v39  ;;  %v366_v53 = vadd.f32 %v365_v44, %v364_v31 }
 0x1af   :  { %v845_v46 = vpop.eup %642  ;;  %v345_v47 = vadd.f32 %v344_v42, %v343_v41  ;;  %v357_v48 = vsel %vm262_vm1, %v843_v43, 0.0 }
 0x1b0   :  { %v371_v49 = vsel %vm262_vm1, %v845_v46, 0.0  ;;  %v355_v50 = vrot.slane %v354_v45, 1  ;;  %v358_v54 = vrot.slane %v357_v48, 4  ;;  %v367_v5 = vrot.slane %v366_v53, 2 }
 0x1b1   :  { %v346_v51 = vrot.slane %v345_v47, 2  ;;  %v372_v52 = vrot.slane %v371_v49, 4 }
 0x1b2   :  { %v356_v55 = vadd.f32 %v355_v50, %v354_v45  ;;  %v359_v56 = vadd.f32 %v358_v54, %v357_v48  ;;  %v368_v63 = vadd.f32 %v367_v5, %v366_v53 }
 0x1b3   :  { %v645_v57 = vpop.eup %644  ;;  %v373_v59 = vadd.f32 %v372_v52, %v371_v49  ;;  %v347_v58 = vadd.f32 %v346_v51, %v345_v47 }
 0x1b4   :  { %v851_v60 = vpop.eup %646  ;;  %v378_v61 = vsel %vm262_vm1, %v645_v57, 0.0  ;;  %650 = vrcp.f32 %v356_v55  ;;  %v360_v22 = vrot.slane %v359_v56, 2  ;;  %v369_v27 = vrot.slane %v368_v63, 1 }
 0x1b5   :  { %v374_v62 = vrot.slane %v373_v59, 2  ;;  %v379_v1 = vrot.slane %v378_v61, 4  ;;  %v385_v2 = vsel %vm262_vm1, %v851_v60, 0.0  ;;  %v348_v4 = vrot.slane %v347_v58, 1 }
 0x1b6   :  { %v386_v14 = vrot.slane %v385_v2, 4  ;;  %v361_v28 = vadd.f32 %v360_v22, %v359_v56  ;;  %v370_v36 = vadd.f32 %v369_v27, %v368_v63 }
 0x1b7   :  { %v380_v13 = vadd.f32 %v379_v1, %v378_v61  ;;  %v349_v15 = vadd.f32 %v348_v4, %v347_v58  ;;  %v375_v16 = vadd.f32 %v374_v62, %v373_v59 }
 0x1b8   :  { %v649_v19 = vpop.eup %648  ;;  %v387_v0 = vadd.f32 %v386_v14, %v385_v2  ;;  %v362_v39 = vrot.slane %v361_v28, 1 }
 0x1b9   :  { %v381_v20 = vrot.slane %v380_v13, 2  ;;  %v392_v21 = vsel %vm262_vm1, %v649_v19, 0.0  ;;  %652 = vrcp.f32 %v349_v15  ;;  %v376_v25 = vrot.slane %v375_v16, 1 }
 0x1ba   :  { %v393_v23 = vrot.slane %v392_v21, 4  ;;  %v388_v29 = vrot.slane %v387_v0, 2  ;;  %v363_v42 = vadd.f32 %v362_v39, %v361_v28 }
 0x1bb   :  { %v382_v24 = vadd.f32 %v381_v20, %v380_v13  ;;  %v377_v34 = vadd.f32 %v376_v25, %v375_v16 }
 0x1bc   :  { %v394_v30 = vadd.f32 %v393_v23, %v392_v21  ;;  %v389_v31 = vadd.f32 %v388_v29, %v387_v0 }
 0x1bd   :  { %v383_v26 = vrot.slane %v382_v24, 1 }
 0x1be   :  { %v395_v37 = vrot.slane %v394_v30, 2  ;;  %v390_v44 = vrot.slane %v389_v31, 1 }
 0x1bf   :  { %v384_v33 = vadd.f32 %v383_v26, %v382_v24 }
 0x1c0   :  { %v396_v45 = vadd.f32 %v395_v37, %v394_v30  ;;  %v391_v47 = vadd.f32 %v390_v44, %v389_v31 }
 0x1c1   :  { %v651_v17 = vpop.eup %650  ;;  %654 = vrcp.f32 %v384_v33 }
 0x1c2   :  { %v408_v18 = vmul.f32 %v651_v17, %v831_v35  ;;  %656 = vrcp.f32 %v377_v34  ;;  %v397_v48 = vrot.slane %v396_v45, 1 }
 0x1c3   :  { %658 = vrcp.f32 %v370_v36 }
 0x1c4   :  { %422 = vperm.xlu1 %617, %v408_v18   ;;  %660 = vrcp.f32 %v363_v42  ;;  %v398_v35 = vadd.f32 %v397_v48, %v396_v45 }
 0x1c5   :  { %662 = vrcp.f32 %v391_v47 }
 0x1c6   :  { %v653_v32 = vpop.eup %652  ;;  %664 = vrcp.f32 %v398_v35 }
 0x1c7   :  { %v407_v41 = vmul.f32 %v653_v32, %v837_v40 }
 0x1c9   :  { %417 = vperm.xlu0 %616, %v407_v41  }
 0x1ce   :  { %v655_v49 = vpop.eup %654 }
 0x1cf   :  { %v412_v50 = vmul.f32 %v655_v49, %v645_v57  ;;  %v657_v51 = vpop.eup %656 }
 0x1d0   :  { %v659_v52 = vpop.eup %658  ;;  %v411_v53 = vmul.f32 %v657_v51, %v845_v46 }
 0x1d1   :  { %442 = vperm.xlu1 %617, %v412_v50   ;;  %v410_v40 = vmul.f32 %v659_v52, %v835_v38  ;;  %v661_v54 = vpop.eup %660 }
 0x1d2   :  { %v409_v55 = vmul.f32 %v661_v54, %v843_v43  ;;  %v663_v59 = vpop.eup %662 }
 0x1d3   :  { %v413_v58 = vmul.f32 %v663_v59, %v851_v60  ;;  %v665_v57 = vpop.eup %664 }
 0x1d4   :  { %v414_v61 = vmul.f32 %v665_v57, %v649_v19 }
 0x1d5   :  { %437 = vperm.xlu1 %617, %v411_v53  }
 0x1d9   :  { %432 = vperm.xlu1 %617, %v410_v40  }
 0x1dd   :  { %427 = vperm.xlu1 %617, %v409_v55  }
 0x1e1   :  { %447 = vperm.xlu1 %617, %v413_v58  }
 0x1e5   :  { %452 = vperm.xlu1 %617, %v414_v61  }
 0x23f   :  { %v423_v1 = vpop.permute.xlu1 %422 }
 0x240   :  { %v456_v2 = vmul.f32 %v423_v1, %v781_v6 }
 0x242   :  { %v470_v5 = vsel %vm70_vm0, %v456_v2, 0.0 }
 0x243   :  { %v471_v60 = vrot.slane %v470_v5, 4 }
 0x244   :  { %v418_v62 = vpop.permute.xlu0 %417 }
 0x245   :  { %v455_v46 = vmul.f32 %v418_v62, %v777_v3  ;;  %v472_v6 = vadd.f32 %v471_v60, %v470_v5 }
 0x247   :  { %v463_v38 = vsel %vm70_vm0, %v455_v46, 0.0  ;;  %v473_v25 = vrot.slane %v472_v6, 2 }
 0x248   :  { %v464_v43 = vrot.slane %v463_v38, 4 }
 0x24a   :  { %v465_v15 = vadd.f32 %v464_v43, %v463_v38 }
 0x24c   :  { %v443_v4 = vpop.permute.xlu1 %442  ;;  %v466_v63 = vrot.slane %v465_v15, 2 }
 0x24d   :  { %v460_v56 = vmul.f32 %v443_v4, %v787_v9 }
 0x24e   :  { %v467_v28 = vadd.f32 %v466_v63, %v465_v15 }
 0x24f   :  { %v498_v16 = vsel %vm70_vm0, %v460_v56, 0.0 }
 0x250   :  { %v438_v13 = vpop.permute.xlu1 %437  ;;  %v499_v22 = vrot.slane %v498_v16, 4  ;;  %v468_v39 = vrot.slane %v467_v28, 1 }
 0x251   :  { %v459_v14 = vmul.f32 %v438_v13, %v785_v8 }
 0x252   :  { %v500_v26 = vadd.f32 %v499_v22, %v498_v16  ;;  %v469_v35 = vadd.f32 %v468_v39, %v467_v28 }
 0x253   :  { %v491_v19 = vsel %vm70_vm0, %v459_v14, 0.0 }
 0x254   :  { %v492_v3 = vrot.slane %v491_v19, 4  ;;  %v433_v20 = vpop.permute.xlu1 %432  ;;  %v501_v36 = vrot.slane %v500_v26, 2 }
 0x255   :  { %v458_v21 = vmul.f32 %v433_v20, %v795_v11  ;;  %v474_v11 = vadd.f32 %v473_v25, %v472_v6 }
 0x256   :  { %v493_v23 = vadd.f32 %v492_v3, %v491_v19  ;;  %v502_v48 = vadd.f32 %v501_v36, %v500_v26 }
 0x257   :  { %v484_v0 = vsel %vm70_vm0, %v458_v21, 0.0  ;;  %v475_v45 = vrot.slane %v474_v11, 1 }
 0x258   :  { %v485_v9 = vrot.slane %v484_v0, 4  ;;  %v428_v24 = vpop.permute.xlu1 %427  ;;  %v494_v30 = vrot.slane %v493_v23, 2  ;;  %v503_v59 = vrot.slane %v502_v48, 1 }
 0x259   :  { %v457_v8 = vmul.f32 %v428_v24, %v783_v7  ;;  %v476_v55 = vadd.f32 %v475_v45, %v474_v11 }
 0x25a   :  { %v486_v27 = vadd.f32 %v485_v9, %v484_v0  ;;  %v495_v41 = vadd.f32 %v494_v30, %v493_v23  ;;  %v504_v5 = vadd.f32 %v503_v59, %v502_v48 }
 0x25b   :  { %v477_v29 = vsel %vm70_vm0, %v457_v8, 0.0 }
 0x25c   :  { %v487_v33 = vrot.slane %v486_v27, 2  ;;  %v478_v34 = vrot.slane %v477_v29, 4  ;;  %v448_v17 = vpop.permute.xlu1 %447  ;;  %v496_v52 = vrot.slane %v495_v41, 1 }
 0x25d   :  { %v461_v18 = vmul.f32 %v448_v17, %v791_v10 }
 0x25e   :  { %v479_v37 = vadd.f32 %v478_v34, %v477_v29  ;;  %v488_v31 = vadd.f32 %v487_v33, %v486_v27  ;;  %v497_v1 = vadd.f32 %v496_v52, %v495_v41 }
 0x25f   :  { %v505_v32 = vsel %vm70_vm0, %v461_v18, 0.0 }
 0x260   :  { %v480_v7 = vrot.slane %v479_v37, 2  ;;  %v506_v42 = vrot.slane %v505_v32, 4  ;;  %v453_v44 = vpop.permute.xlu1 %452  ;;  %v489_v51 = vrot.slane %v488_v31, 1 }
 0x261   :  { %v462_v47 = vmul.f32 %v453_v44, %v803_v12  ;;  %v528_v12 = vsel %vm527_vm2, %v476_v55, %v469_v35 }
 0x262   :  { %v481_v49 = vadd.f32 %v480_v7, %v479_v37  ;;  %v507_v50 = vadd.f32 %v506_v42, %v505_v32  ;;  %v490_v62 = vadd.f32 %v489_v51, %v488_v31 }
 0x263   :  { %v512_v10 = vsel %vm70_vm0, %v462_v47, 0.0 }
 0x264   :  { %v482_v53 = vrot.slane %v481_v49, 1  ;;  %v508_v40 = vrot.slane %v507_v50, 2  ;;  %v513_v54 = vrot.slane %v512_v10, 4 }
 0x266   :  { %v483_v58 = vadd.f32 %v482_v53, %v481_v49  ;;  %v509_v57 = vadd.f32 %v508_v40, %v507_v50  ;;  %v514_v61 = vadd.f32 %v513_v54, %v512_v10 }
 0x268   :  { %v530_v46 = vsel %vm529_vm3, %v483_v58, %v528_v12  ;;  %v510_v2 = vrot.slane %v509_v57, 1  ;;  %v515_v38 = vrot.slane %v514_v61, 2 }
 0x269   :  { %v532_v4 = vsel %vm531_vm4, %v490_v62, %v530_v46 }
 0x26a   :  { %v516_v43 = vadd.f32 %v515_v38, %v514_v61  ;;  %v534_v56 = vsel %vm533_vm5, %v497_v1, %v532_v4  ;;  %v511_v13 = vadd.f32 %v510_v2, %v509_v57 }
 0x26b   :  { %v536_v14 = vsel %vm535_vm6, %v504_v5, %v534_v56 }
 0x26c   :  { %v517_v60 = vrot.slane %v516_v43, 1  ;;  %v538_v16 = vsel %vm537_vm7, %v511_v13, %v536_v14 }
 0x26e   :  { %v518_v15 = vadd.f32 %v517_v60, %v516_v43 }
 0x270   :  { %v540_v19 = vsel %vm539_vm8, %v518_v15, %v538_v16 }
 0x271   :  { %542 = vst.msk [vmem:[#allocation8] sm:$0xff] %vm70_vm0, %v540_v19 }
 0x272   :  { %717 = shalt.err (!%p714_p0)
}
 0x273   :  { %552 = dma.vmem_to_hbm [thread:$0]  %s550_s7, 128, %s888_s5, [#allocation5]  }
 0x274   :  { %730 = dma.done.wait [#allocation5], 128  }
 0x275   :  { %731 = vsyncadd [#allocation5], 4294967168 }
 0x276   :  { %556 = vsyncpa [#allocation4], 1 }
 0x277   :  { %557 = vsyncpa [#allocation7], 1 }
 0x278   :  { %558 = vsyncpa [#allocation5], 1 }

</bundles_post_ra>
